<compile_context>
chip_gen: v6e
topology: v6e:2x2x1
jax: 0.10.0
libtpu: 0.0.40
codegen_flags: <defaults>
</compile_context>

<pallas_src>
import functools

import jax
import jax.numpy as jnp
from jax import lax
from jax.experimental import pallas as pl
from jax.experimental.pallas import tpu as pltpu


def mha_kernel(x_ref, wq_ref, bq_ref, wkv_ref, bkv_ref, wp_ref, bp_ref,
               o_ref, kv_ref, *, num_heads, head_dim, q_tile, inv_scale):
    """One (batch, q-tile) grid step.

    x_ref  : (1, N, E)   full sequence for this batch (resident across q-tiles)
    wq_ref : (E, E)      query projection (input-major: y = x @ W + b)
    bq_ref : (1, E)
    wkv_ref: (E, 2E)     fused [K | V] projection
    bkv_ref: (1, 2E)
    wp_ref : (E, E)      output projection
    bp_ref : (1, E)
    o_ref  : (1, TQ, E)  output tile
    kv_ref : (N, 2E)     VMEM scratch: cached [K | V] for the current batch
    """
    qi = pl.program_id(1)
    in_dt = x_ref.dtype
    E = num_heads * head_dim

    # --- K/V projection: once per batch, cached in VMEM across q-tiles. ---
    @pl.when(qi == 0)
    def _():
        x_full = x_ref[0]                                              # (N, E)
        kv = (jnp.dot(x_full, wkv_ref[...],
                      preferred_element_type=jnp.float32)
              + bkv_ref[...])                                          # (N, 2E)
        kv_ref[...] = kv.astype(kv_ref.dtype)

    # --- Q projection for this tile (rows sliced from the resident block). ---
    row0 = pl.multiple_of(qi * q_tile, q_tile)
    xq = x_ref[0, pl.ds(row0, q_tile), :]                              # (TQ, E)
    q = (jnp.dot(xq, wq_ref[...], preferred_element_type=jnp.float32)
         + bq_ref[...]) * inv_scale                                    # (TQ, E)
    q = q.astype(in_dt)

    kv = kv_ref[...]                                                   # (N, 2E)

    # --- Per-head attention (static unrolled loop over heads). ---
    out_heads = []
    for h in range(num_heads):
        lo = h * head_dim
        q_h = q[:, lo:lo + head_dim]                                   # (TQ, d)
        k_h = kv[:, lo:lo + head_dim]                                  # (N, d)
        v_h = kv[:, E + lo:E + lo + head_dim]                          # (N, d)

        # energy = q_h @ k_h^T without an explicit transpose.
        energy = lax.dot_general(q_h, k_h, (((1,), (1,)), ((), ())),
                                 preferred_element_type=jnp.float32)  # (TQ, N)

        # Softmax in f32; divide -> EUP reciprocal.
        m = jnp.max(energy, axis=-1, keepdims=True)
        p = jnp.exp(energy - m)
        denom = jnp.sum(p, axis=-1, keepdims=True)
        att = (p * pl.reciprocal(denom, approx=True)).astype(in_dt)    # (TQ, N)

        out_heads.append(
            jnp.dot(att, v_h, preferred_element_type=jnp.float32))     # (TQ, d)

    # 'b h n d -> b n (h d)' is a lane concat; one full-depth projection.
    out_cat = jnp.concatenate(out_heads, axis=-1).astype(in_dt)        # (TQ, E)
    out = (jnp.dot(out_cat, wp_ref[...], preferred_element_type=jnp.float32)
           + bp_ref[...])                                              # (TQ, E)
    o_ref[0] = out.astype(o_ref.dtype)


def _pick_q_tile(n, max_tq):
    """Largest q-tile <= max_tq that divides n and is sublane (8) aligned."""
    if n <= max_tq:
        return n
    for t in range(min(max_tq, n), 7, -1):
        if n % t == 0 and t % 8 == 0:
            return t
    raise ValueError(
        f"No sublane-aligned q-tile <= {max_tq} divides sequence length {n}; "
        "pad the sequence or pass an explicit q_tile.")


def multi_head_attention(x, wq, bq, wk, bk, wv, bv, wp, bp, *, num_heads,
                         q_tile=512, vmem_limit_bytes=None):
    """x: (B, N, E). Weights are (E, E) input-major (y = x @ W + b), biases (E,)."""
    B, N, E = x.shape
    H = num_heads
    assert E % H == 0, "emb_size must be divisible by num_heads"
    d = E // H

    TQ = _pick_q_tile(N, q_tile)
    n_q = N // TQ

    # Fused [K | V] projection so the once-per-batch projection is one matmul.
    wkv = jnp.concatenate([wk, wv], axis=1)            # (E, 2E)
    bkv = jnp.concatenate([bk, bv]).reshape(1, 2 * E)  # (1, 2E)
    bq2 = bq.reshape(1, E)
    bp2 = bp.reshape(1, E)

    kernel = functools.partial(
        mha_kernel, num_heads=H, head_dim=d, q_tile=TQ,
        inv_scale=1.0 / (E ** 0.5))  # torch: energy / sqrt(emb_size)

    full = lambda shape: pl.BlockSpec(shape, lambda b, qi: (0,) * len(shape))

    in_specs = [
        # Full sequence, resident across all q-tiles of a batch (single DMA).
        pl.BlockSpec((1, N, E), lambda b, qi: (b, 0, 0)),
        full((E, E)), full((1, E)),          # Wq, bq
        full((E, 2 * E)), full((1, 2 * E)),  # W_kv, b_kv
        full((E, E)), full((1, E)),          # Wp, bp
    ]
    out_specs = pl.BlockSpec((1, TQ, E), lambda b, qi: (b, qi, 0))

    # Advisory cost hint so XLA schedules surrounding ops around the kernel.
    itemsize = jnp.dtype(x.dtype).itemsize
    flops = int(2 * B * N * E * (3 * E)          # Q/K/V projections
                + 4 * B * H * N * N * d          # energy + att@V
                + 2 * B * N * E * E)             # output projection
    cost = pl.CostEstimate(
        flops=flops,
        transcendentals=int(B * H * N * N),
        bytes_accessed=int((2 * B * N * E + 4 * E * E + 4 * E) * itemsize),
    )

    # NOTE: on v7x (64 MiB VMEM) pass bf16 activations/weights and an explicit
    # vmem_limit_bytes for long sequences; defaults are ample for these shapes.
    compiler_params = pltpu.CompilerParams(
        dimension_semantics=("parallel", "arbitrary"),
        vmem_limit_bytes=vmem_limit_bytes,
    )

    return pl.pallas_call(
        kernel,
        out_shape=jax.ShapeDtypeStruct((B, N, E), x.dtype),
        grid_spec=pltpu.PrefetchScalarGridSpec(
            num_scalar_prefetch=0,
            grid=(B, n_q),
            in_specs=in_specs,
            out_specs=out_specs,
            # Cached [K | V] for the current batch, reused by every q-tile.
            scratch_shapes=[pltpu.VMEM((N, 2 * E), x.dtype)],
        ),
        compiler_params=compiler_params,
        cost_estimate=cost,
    )(x, wq, bq2, wkv, bkv, wp, bp2)


def _init_linear(key, emb_size):
    """PyTorch nn.Linear-style init: W (out,in), b (out,), U(-1/sqrt(in), 1/sqrt(in))."""
    kw, kb = jax.random.split(key)
    bound = 1.0 / (emb_size ** 0.5)
    w = jax.random.uniform(kw, (emb_size, emb_size), jnp.float32, -bound, bound)
    b = jax.random.uniform(kb, (emb_size,), jnp.float32, -bound, bound)
    return w, b


def _reference(x, wq, bq, wk, bk, wv, bv, wp, bp, num_heads):
    """Pure-JAX reference mirroring the PyTorch forward (eval mode, no mask)."""
    B, N, E = x.shape
    d = E // num_heads

    def split_heads(t):  # (B, N, E) -> (B, H, N, d)
        return t.reshape(B, N, num_heads, d).transpose(0, 2, 1, 3)

    q = split_heads(x @ wq + bq)
    k = split_heads(x @ wk + bk)
    v = split_heads(x @ wv + bv)
    energy = jnp.einsum('bhqd,bhkd->bhqk', q, k)
    att = jax.nn.softmax(energy / (E ** 0.5), axis=-1)
    out = jnp.einsum('bhal,bhlv->bhav', att, v)
    out = out.transpose(0, 2, 1, 3).reshape(B, N, E)
    return out @ wp + bp


def _run_case(key, B, N, E, H, q_tile):
    kx, kq, kk, kv, kp = jax.random.split(key, 5)
    x = jax.random.normal(kx, (B, N, E), jnp.float32)

    wq_t, bq = _init_linear(kq, E)   # torch layout (out, in)
    wk_t, bk = _init_linear(kk, E)
    wv_t, bv = _init_linear(kv, E)
    wp_t, bp = _init_linear(kp, E)

    # Pass pre-transposed weights (in, out) so the kernel computes x @ W + b,
    # which equals torch's x @ W_torch.T + b.
    out = multi_head_attention(x, wq_t.T, bq, wk_t.T, bk, wv_t.T, bv,
                               wp_t.T, bp, num_heads=H, q_tile=q_tile)
    out = jax.block_until_ready(out)

    ref = _reference(x, wq_t.T, bq, wk_t.T, bk, wv_t.T, bv, wp_t.T, bp, H)
    assert out.shape == (B, N, E)
    # Tolerance accounts for the EUP approximate reciprocal in the softmax.
    assert jnp.allclose(out, ref, atol=2e-3, rtol=2e-3), "mismatch vs JAX reference"


if __name__ == "__main__":
    key = jax.random.PRNGKey(0)
    k1, k2 = jax.random.split(key)

    # Small config consistent with the module: B=2, seq=8, emb_size=32, heads=4.
    _run_case(k1, B=2, N=8, E=32, H=4, q_tile=512)
    # Exercise multi-q-tile path (2 q-tiles of 8 rows) and the per-batch
    # K/V cache reuse across q-tiles.
    _run_case(k2, B=2, N=16, E=32, H=4, q_tile=8)

    print("KERNEL_OK")
</pallas_src>

<mosaic_0001>
module attributes {stable_mosaic.version = 11 : i64} {
  func.func @mha_kernel(%arg0: i32, %arg1: i32, %arg2: memref<1x8x32xf32, #tpu.memory_space<vmem>>, %arg3: memref<32x32xf32, #tpu.memory_space<vmem>>, %arg4: memref<1x32xf32, #tpu.memory_space<vmem>>, %arg5: memref<32x64xf32, #tpu.memory_space<vmem>>, %arg6: memref<1x64xf32, #tpu.memory_space<vmem>>, %arg7: memref<32x32xf32, #tpu.memory_space<vmem>>, %arg8: memref<1x32xf32, #tpu.memory_space<vmem>>, %arg9: memref<1x8x32xf32, #tpu.memory_space<vmem>>, %arg10: memref<8x64xf32, #tpu.memory_space<vmem>>) attributes {dimension_semantics = [#tpu.dimension_semantics<parallel>, #tpu.dimension_semantics<arbitrary>], iteration_bounds = array<i64: 2, 1>, scalar_prefetch = 0 : i64, scratch_operands = 1 : i64, tpu.core_type = #tpu.core_type<tc>, window_params = [{transform_indices = @transform_0, window_bounds = array<i64: 1, 8, 32>}, {pipeline_mode = #tpu.pipeline_mode<synchronous>, transform_indices = @transform_1, window_bounds = array<i64: 32, 32>}, {pipeline_mode = #tpu.pipeline_mode<synchronous>, transform_indices = @transform_2, window_bounds = array<i64: 1, 32>}, {pipeline_mode = #tpu.pipeline_mode<synchronous>, transform_indices = @transform_3, window_bounds = array<i64: 32, 64>}, {pipeline_mode = #tpu.pipeline_mode<synchronous>, transform_indices = @transform_4, window_bounds = array<i64: 1, 64>}, {pipeline_mode = #tpu.pipeline_mode<synchronous>, transform_indices = @transform_5, window_bounds = array<i64: 32, 32>}, {pipeline_mode = #tpu.pipeline_mode<synchronous>, transform_indices = @transform_6, window_bounds = array<i64: 1, 32>}, {transform_indices = @transform_7, window_bounds = array<i64: 1, 8, 32>}]} {
    %c0_i32 = arith.constant 0 : i32
    %0 = arith.cmpi eq, %arg1, %c0_i32 : i32
    %1 = arith.extui %0 : i1 to i32
    %c0_i32_0 = arith.constant 0 : i32
    %2 = arith.cmpi ne, %1, %c0_i32_0 : i32
    scf.if %2 {
      %c0_33 = arith.constant 0 : index
      %c0_34 = arith.constant 0 : index
      %c0_35 = arith.constant 0 : index
      %85 = vector.load %arg2[%c0_33, %c0_34, %c0_35] : memref<1x8x32xf32, #tpu.memory_space<vmem>>, vector<1x8x32xf32>
      %86 = vector.shape_cast %85 : vector<1x8x32xf32> to vector<8x32xf32>
      %c0_36 = arith.constant 0 : index
      %c0_37 = arith.constant 0 : index
      %87 = vector.load %arg5[%c0_36, %c0_37] : memref<32x64xf32, #tpu.memory_space<vmem>>, vector<32x64xf32>
      %cst_38 = arith.constant dense<0.000000e+00> : vector<8x64xf32>
      %88 = tpu.matmul %86, %87, %cst_38 {dimension_numbers = #tpu.dot_dimension_numbers<[1], [0], [0], [1], [0, 0, 1, 1], [], []>} : vector<8x32xf32>, vector<32x64xf32>, vector<8x64xf32> -> vector<8x64xf32>
      %c0_39 = arith.constant 0 : index
      %c0_40 = arith.constant 0 : index
      %89 = vector.load %arg6[%c0_39, %c0_40] : memref<1x64xf32, #tpu.memory_space<vmem>>, vector<1x64xf32>
      %90 = vector.broadcast %89 : vector<1x64xf32> to vector<8x64xf32>
      %91 = arith.addf %88, %90 : vector<8x64xf32>
      %c0_41 = arith.constant 0 : index
      %c0_42 = arith.constant 0 : index
      %92 = vector.load %arg10[%c0_41, %c0_42] : memref<8x64xf32, #tpu.memory_space<vmem>>, vector<8x64xf32>
      tpu.vector_store %arg10[%c0_41, %c0_42], %91 {strides = array<i32>} : memref<8x64xf32, #tpu.memory_space<vmem>>, vector<8x64xf32>,
    } else {
    }
    %c8_i32 = arith.constant 8 : i32
    %3 = arith.muli %arg1, %c8_i32 : i32
    %4 = tpu.assume_multiple %3, 8 : i32
    %c0 = arith.constant 0 : index
    %5 = arith.index_cast %4 : i32 to index
    %c0_1 = arith.constant 0 : index
    %6 = vector.load %arg2[%c0, %5, %c0_1] : memref<1x8x32xf32, #tpu.memory_space<vmem>>, vector<1x8x32xf32>
    %7 = vector.shape_cast %6 : vector<1x8x32xf32> to vector<8x32xf32>
    %c0_2 = arith.constant 0 : index
    %c0_3 = arith.constant 0 : index
    %8 = vector.load %arg3[%c0_2, %c0_3] : memref<32x32xf32, #tpu.memory_space<vmem>>, vector<32x32xf32>
    %cst = arith.constant dense<0.000000e+00> : vector<8x32xf32>
    %9 = tpu.matmul %7, %8, %cst {dimension_numbers = #tpu.dot_dimension_numbers<[1], [0], [0], [1], [0, 0, 1, 1], [], []>} : vector<8x32xf32>, vector<32x32xf32>, vector<8x32xf32> -> vector<8x32xf32>
    %c0_4 = arith.constant 0 : index
    %c0_5 = arith.constant 0 : index
    %10 = vector.load %arg4[%c0_4, %c0_5] : memref<1x32xf32, #tpu.memory_space<vmem>>, vector<1x32xf32>
    %11 = vector.broadcast %10 : vector<1x32xf32> to vector<8x32xf32>
    %12 = arith.addf %9, %11 : vector<8x32xf32>
    %cst_6 = arith.constant 0.176776692 : f32
    %13 = vector.broadcast %cst_6 : f32 to vector<8x32xf32>
    %14 = arith.mulf %12, %13 : vector<8x32xf32>
    %c0_7 = arith.constant 0 : index
    %c0_8 = arith.constant 0 : index
    %15 = vector.load %arg10[%c0_7, %c0_8] : memref<8x64xf32, #tpu.memory_space<vmem>>, vector<8x64xf32>
    %16 = vector.extract_strided_slice %14 {offsets = [0, 0], sizes = [8, 8], strides = [1, 1]} : vector<8x32xf32> to vector<8x8xf32>
    %17 = vector.extract_strided_slice %15 {offsets = [0, 0], sizes = [8, 8], strides = [1, 1]} : vector<8x64xf32> to vector<8x8xf32>
    %18 = vector.extract_strided_slice %15 {offsets = [0, 32], sizes = [8, 8], strides = [1, 1]} : vector<8x64xf32> to vector<8x8xf32>
    %cst_9 = arith.constant dense<0.000000e+00> : vector<8x8xf32>
    %19 = tpu.matmul %16, %17, %cst_9 {dimension_numbers = #tpu.dot_dimension_numbers<[1], [1], [0], [0], [0, 0, 1, 0], [], []>} : vector<8x8xf32>, vector<8x8xf32>, vector<8x8xf32> -> vector<8x8xf32>
    %cst_10 = arith.constant dense<0xFF800000> : vector<8xf32>
    %20 = vector.multi_reduction <maximumf>, %19, %cst_10 [1] : vector<8x8xf32> to vector<8xf32>
    %21 = vector.shape_cast %20 : vector<8xf32> to vector<8x1xf32>
    %22 = vector.broadcast %21 : vector<8x1xf32> to vector<8x8xf32>
    %23 = arith.subf %19, %22 : vector<8x8xf32>
    %24 = math.exp %23 : vector<8x8xf32>
    %cst_11 = arith.constant dense<0.000000e+00> : vector<8xf32>
    %25 = vector.multi_reduction <add>, %24, %cst_11 [1] : vector<8x8xf32> to vector<8xf32>
    %26 = vector.shape_cast %25 : vector<8xf32> to vector<8x1xf32>
    %27 = tpu.reciprocal %26 {approx = true} : vector<8x1xf32> -> vector<8x1xf32>
    %28 = vector.broadcast %27 : vector<8x1xf32> to vector<8x8xf32>
    %29 = arith.mulf %24, %28 : vector<8x8xf32>
    %cst_12 = arith.constant dense<0.000000e+00> : vector<8x8xf32>
    %30 = tpu.matmul %29, %18, %cst_12 {dimension_numbers = #tpu.dot_dimension_numbers<[1], [0], [0], [1], [0, 0, 1, 1], [], []>} : vector<8x8xf32>, vector<8x8xf32>, vector<8x8xf32> -> vector<8x8xf32>
    %31 = vector.extract_strided_slice %14 {offsets = [0, 8], sizes = [8, 8], strides = [1, 1]} : vector<8x32xf32> to vector<8x8xf32>
    %32 = vector.extract_strided_slice %15 {offsets = [0, 8], sizes = [8, 8], strides = [1, 1]} : vector<8x64xf32> to vector<8x8xf32>
    %33 = vector.extract_strided_slice %15 {offsets = [0, 40], sizes = [8, 8], strides = [1, 1]} : vector<8x64xf32> to vector<8x8xf32>
    %cst_13 = arith.constant dense<0.000000e+00> : vector<8x8xf32>
    %34 = tpu.matmul %31, %32, %cst_13 {dimension_numbers = #tpu.dot_dimension_numbers<[1], [1], [0], [0], [0, 0, 1, 0], [], []>} : vector<8x8xf32>, vector<8x8xf32>, vector<8x8xf32> -> vector<8x8xf32>
    %cst_14 = arith.constant dense<0xFF800000> : vector<8xf32>
    %35 = vector.multi_reduction <maximumf>, %34, %cst_14 [1] : vector<8x8xf32> to vector<8xf32>
    %36 = vector.shape_cast %35 : vector<8xf32> to vector<8x1xf32>
    %37 = vector.broadcast %36 : vector<8x1xf32> to vector<8x8xf32>
    %38 = arith.subf %34, %37 : vector<8x8xf32>
    %39 = math.exp %38 : vector<8x8xf32>
    %cst_15 = arith.constant dense<0.000000e+00> : vector<8xf32>
    %40 = vector.multi_reduction <add>, %39, %cst_15 [1] : vector<8x8xf32> to vector<8xf32>
    %41 = vector.shape_cast %40 : vector<8xf32> to vector<8x1xf32>
    %42 = tpu.reciprocal %41 {approx = true} : vector<8x1xf32> -> vector<8x1xf32>
    %43 = vector.broadcast %42 : vector<8x1xf32> to vector<8x8xf32>
    %44 = arith.mulf %39, %43 : vector<8x8xf32>
    %cst_16 = arith.constant dense<0.000000e+00> : vector<8x8xf32>
    %45 = tpu.matmul %44, %33, %cst_16 {dimension_numbers = #tpu.dot_dimension_numbers<[1], [0], [0], [1], [0, 0, 1, 1], [], []>} : vector<8x8xf32>, vector<8x8xf32>, vector<8x8xf32> -> vector<8x8xf32>
    %46 = vector.extract_strided_slice %14 {offsets = [0, 16], sizes = [8, 8], strides = [1, 1]} : vector<8x32xf32> to vector<8x8xf32>
    %47 = vector.extract_strided_slice %15 {offsets = [0, 16], sizes = [8, 8], strides = [1, 1]} : vector<8x64xf32> to vector<8x8xf32>
    %48 = vector.extract_strided_slice %15 {offsets = [0, 48], sizes = [8, 8], strides = [1, 1]} : vector<8x64xf32> to vector<8x8xf32>
    %cst_17 = arith.constant dense<0.000000e+00> : vector<8x8xf32>
    %49 = tpu.matmul %46, %47, %cst_17 {dimension_numbers = #tpu.dot_dimension_numbers<[1], [1], [0], [0], [0, 0, 1, 0], [], []>} : vector<8x8xf32>, vector<8x8xf32>, vector<8x8xf32> -> vector<8x8xf32>
    %cst_18 = arith.constant dense<0xFF800000> : vector<8xf32>
    %50 = vector.multi_reduction <maximumf>, %49, %cst_18 [1] : vector<8x8xf32> to vector<8xf32>
    %51 = vector.shape_cast %50 : vector<8xf32> to vector<8x1xf32>
    %52 = vector.broadcast %51 : vector<8x1xf32> to vector<8x8xf32>
    %53 = arith.subf %49, %52 : vector<8x8xf32>
    %54 = math.exp %53 : vector<8x8xf32>
    %cst_19 = arith.constant dense<0.000000e+00> : vector<8xf32>
    %55 = vector.multi_reduction <add>, %54, %cst_19 [1] : vector<8x8xf32> to vector<8xf32>
    %56 = vector.shape_cast %55 : vector<8xf32> to vector<8x1xf32>
    %57 = tpu.reciprocal %56 {approx = true} : vector<8x1xf32> -> vector<8x1xf32>
    %58 = vector.broadcast %57 : vector<8x1xf32> to vector<8x8xf32>
    %59 = arith.mulf %54, %58 : vector<8x8xf32>
    %cst_20 = arith.constant dense<0.000000e+00> : vector<8x8xf32>
    %60 = tpu.matmul %59, %48, %cst_20 {dimension_numbers = #tpu.dot_dimension_numbers<[1], [0], [0], [1], [0, 0, 1, 1], [], []>} : vector<8x8xf32>, vector<8x8xf32>, vector<8x8xf32> -> vector<8x8xf32>
    %61 = vector.extract_strided_slice %14 {offsets = [0, 24], sizes = [8, 8], strides = [1, 1]} : vector<8x32xf32> to vector<8x8xf32>
    %62 = vector.extract_strided_slice %15 {offsets = [0, 24], sizes = [8, 8], strides = [1, 1]} : vector<8x64xf32> to vector<8x8xf32>
    %63 = vector.extract_strided_slice %15 {offsets = [0, 56], sizes = [8, 8], strides = [1, 1]} : vector<8x64xf32> to vector<8x8xf32>
    %cst_21 = arith.constant dense<0.000000e+00> : vector<8x8xf32>
    %64 = tpu.matmul %61, %62, %cst_21 {dimension_numbers = #tpu.dot_dimension_numbers<[1], [1], [0], [0], [0, 0, 1, 0], [], []>} : vector<8x8xf32>, vector<8x8xf32>, vector<8x8xf32> -> vector<8x8xf32>
    %cst_22 = arith.constant dense<0xFF800000> : vector<8xf32>
    %65 = vector.multi_reduction <maximumf>, %64, %cst_22 [1] : vector<8x8xf32> to vector<8xf32>
    %66 = vector.shape_cast %65 : vector<8xf32> to vector<8x1xf32>
    %67 = vector.broadcast %66 : vector<8x1xf32> to vector<8x8xf32>
    %68 = arith.subf %64, %67 : vector<8x8xf32>
    %69 = math.exp %68 : vector<8x8xf32>
    %cst_23 = arith.constant dense<0.000000e+00> : vector<8xf32>
    %70 = vector.multi_reduction <add>, %69, %cst_23 [1] : vector<8x8xf32> to vector<8xf32>
    %71 = vector.shape_cast %70 : vector<8xf32> to vector<8x1xf32>
    %72 = tpu.reciprocal %71 {approx = true} : vector<8x1xf32> -> vector<8x1xf32>
    %73 = vector.broadcast %72 : vector<8x1xf32> to vector<8x8xf32>
    %74 = arith.mulf %69, %73 : vector<8x8xf32>
    %cst_24 = arith.constant dense<0.000000e+00> : vector<8x8xf32>
    %75 = tpu.matmul %74, %63, %cst_24 {dimension_numbers = #tpu.dot_dimension_numbers<[1], [0], [0], [1], [0, 0, 1, 1], [], []>} : vector<8x8xf32>, vector<8x8xf32>, vector<8x8xf32> -> vector<8x8xf32>
    %76 = tpu.concatenate %30, %45, %60, %75 in 1 : vector<8x8xf32>, vector<8x8xf32>, vector<8x8xf32>, vector<8x8xf32> -> vector<8x32xf32>
    %c0_25 = arith.constant 0 : index
    %c0_26 = arith.constant 0 : index
    %77 = vector.load %arg7[%c0_25, %c0_26] : memref<32x32xf32, #tpu.memory_space<vmem>>, vector<32x32xf32>
    %cst_27 = arith.constant dense<0.000000e+00> : vector<8x32xf32>
    %78 = tpu.matmul %76, %77, %cst_27 {dimension_numbers = #tpu.dot_dimension_numbers<[1], [0], [0], [1], [0, 0, 1, 1], [], []>} : vector<8x32xf32>, vector<32x32xf32>, vector<8x32xf32> -> vector<8x32xf32>
    %c0_28 = arith.constant 0 : index
    %c0_29 = arith.constant 0 : index
    %79 = vector.load %arg8[%c0_28, %c0_29] : memref<1x32xf32, #tpu.memory_space<vmem>>, vector<1x32xf32>
    %80 = vector.broadcast %79 : vector<1x32xf32> to vector<8x32xf32>
    %81 = arith.addf %78, %80 : vector<8x32xf32>
    %c0_30 = arith.constant 0 : index
    %c0_31 = arith.constant 0 : index
    %c0_32 = arith.constant 0 : index
    %82 = vector.load %arg9[%c0_30, %c0_31, %c0_32] : memref<1x8x32xf32, #tpu.memory_space<vmem>>, vector<1x8x32xf32>
    %83 = vector.shape_cast %82 : vector<1x8x32xf32> to vector<8x32xf32>
    %84 = vector.shape_cast %81 : vector<8x32xf32> to vector<1x8x32xf32>
    tpu.vector_store %arg9[%c0_30, %c0_31, %c0_32], %84 {strides = array<i32>} : memref<1x8x32xf32, #tpu.memory_space<vmem>>, vector<1x8x32xf32>,
    return
  }
  func.func @transform_0(%arg0: i32, %arg1: i32) -> (i32, i32, i32) {
    %c0_i32 = arith.constant 0 : i32
    %c0_i32_0 = arith.constant 0 : i32
    %c0_i32_1 = arith.constant 0 : i32
    return %arg0, %c0_i32, %c0_i32_0 : i32, i32, i32
  }
  func.func @transform_1(%arg0: i32, %arg1: i32) -> (i32, i32) {
    %c0_i32 = arith.constant 0 : i32
    %c0_i32_0 = arith.constant 0 : i32
    %c0_i32_1 = arith.constant 0 : i32
    return %c0_i32, %c0_i32_0 : i32, i32
  }
  func.func @transform_2(%arg0: i32, %arg1: i32) -> (i32, i32) {
    %c0_i32 = arith.constant 0 : i32
    %c0_i32_0 = arith.constant 0 : i32
    %c0_i32_1 = arith.constant 0 : i32
    return %c0_i32, %c0_i32_0 : i32, i32
  }
  func.func @transform_3(%arg0: i32, %arg1: i32) -> (i32, i32) {
    %c0_i32 = arith.constant 0 : i32
    %c0_i32_0 = arith.constant 0 : i32
    %c0_i32_1 = arith.constant 0 : i32
    return %c0_i32, %c0_i32_0 : i32, i32
  }
  func.func @transform_4(%arg0: i32, %arg1: i32) -> (i32, i32) {
    %c0_i32 = arith.constant 0 : i32
    %c0_i32_0 = arith.constant 0 : i32
    %c0_i32_1 = arith.constant 0 : i32
    return %c0_i32, %c0_i32_0 : i32, i32
  }
  func.func @transform_5(%arg0: i32, %arg1: i32) -> (i32, i32) {
    %c0_i32 = arith.constant 0 : i32
    %c0_i32_0 = arith.constant 0 : i32
    %c0_i32_1 = arith.constant 0 : i32
    return %c0_i32, %c0_i32_0 : i32, i32
  }
  func.func @transform_6(%arg0: i32, %arg1: i32) -> (i32, i32) {
    %c0_i32 = arith.constant 0 : i32
    %c0_i32_0 = arith.constant 0 : i32
    %c0_i32_1 = arith.constant 0 : i32
    return %c0_i32, %c0_i32_0 : i32, i32
  }
  func.func @transform_7(%arg0: i32, %arg1: i32) -> (i32, i32, i32) {
    %c0_i32 = arith.constant 0 : i32
    %c0_i32_0 = arith.constant 0 : i32
    return %arg0, %arg1, %c0_i32 : i32, i32, i32
  }
}

</mosaic_0001>

<bundles_post_ra>
// kernel: tpu_custom_call.1
= control target key start
LH: loop header
LB: loop body
LE: loop exit
PB: predicated region body
PF: predicated region fallthrough
CT: control target
= control target key end

     0   :  { %s2221_s0 = inlined_call_operand.hbm [shape: f32[2,8,32], index: 0, kind: input, shape index: {}]   ;;  %s2222_s1 = inlined_call_operand.hbm [shape: f32[32,32], index: 1, kind: input, shape index: {}]   ;;  %s2223_s2 = inlined_call_operand.vmem [shape: f32[1,32], index: 2, kind: input, shape index: {}]   ;;  %s2224_s3 = inlined_call_operand.hbm [shape: f32[32,64], index: 3, kind: input, shape index: {}]   ;;  %s2225_s4 = inlined_call_operand.vmem [shape: f32[1,64], index: 4, kind: input, shape index: {}]   ;;  %s2226_s5 = inlined_call_operand.hbm [shape: f32[32,32], index: 5, kind: input, shape index: {}]   ;;  %s2227_s6 = inlined_call_operand.vmem [shape: f32[1,32], index: 6, kind: input, shape index: {}]   ;;  %s2228_s7 = inlined_call_operand.hbm [shape: f32[2,8,32], index: 7, kind: output, shape index: {}]  }
   0x1   :  { %2233 = sst [smem:[#allocation16_spill]] %s2222_s1 }
   0x2   :  { %2234 = sst [smem:[#allocation17_spill]] %s2224_s3 }
   0x3   :  { %2235 = sst [smem:[#allocation18_spill]] %s2226_s5 }
   0x4   :  { %12 = vsyncpa [#allocation4], 0 }
   0x5   :  { %14 = vsyncpa [#allocation4 + $0x1], 0 }
   0x6   :  { %15 = vsyncpa [#allocation7], 0 }
   0x7   :  { %16 = vsyncpa [#allocation10], 0 }
   0x8   :  { %17 = vsyncpa [#allocation5], 0 }
   0x9   :  { %19 = vsyncpa [#allocation5 + $0x1], 0  ;;  %s1939_s24 = smov 0   ;;  %s1941_s25 = smov 0  }
   0xa   :  { %s1943_s26 = smov 0   ;;  %s1945_s27 = smov 0  }
   0xb   :  { %s1947_s28 = smov 0   ;;  %s1949_s29 = smov 0  }
   0xc LB: > { %s1420_s30 = sadd.s32 4294967295, %s1878_s29   ;;  %s1421_s8 = sadd.s32 4294967294, %s1878_s29   ;;  %s1878_s29 = sphi %s1949_s29, %s25_s29   ;;  %s1874_s28 = sphi %s1947_s28, %s2256_s28   ;;  %s1870_s27 = sphi %s1945_s27, %s2255_s27   ;;  %s1866_s26 = sphi %s1943_s26, %s2254_s26   ;;  %s1862_s25 = sphi %s1941_s25, %s2253_s25   ;;  %s1858_s24 = sphi %s1939_s24, %s2252_s24  }
   0xd   : > { %p57_p0 = scmp.ne.s32.totalorder %s1862_s25, %s1858_s24  ;;  %p1973_p1 = scmp.eq.s32.totalorder %s1420_s30, 0 }
   0xe   : > { %p1977_p2 = scmp.eq.s32.totalorder %s1420_s30, 1  ;;  %p215_p3 = scmp.eq.s32.totalorder %s1421_s8, 1 }
   0xf   : > { %s2236_s9 = scalar_select %p1973_p1, 1, 0 }
  0x10   : > { %p1983_p4 = por %p1973_p1, %p57_p0  ;;  %p1422_p5 = scmp.ge.s32.totalorder %s1878_s29, 1 }
  0x11   : > { %p1988_p6 = por %p215_p3, %p57_p0  ;;  %p222_p7 = scmp.lt.s32.totalorder %s1878_s29, 3 }
  0x12   : > { %s2238_s11 = scalar_select %p1983_p4, 1, 0 }
  0x13   : > { %s2239_s12 = scalar_select %p1988_p6, 1, 0 }
  0x14   : > { %p1993_p8 = pnand %p1422_p5, %p222_p7  ;;  %s1880_s14 = smov [#allocation6]  }
  0x15   : > { %s234_s15 = sshll.u32 %s1880_s14, 4  ;;  %s1881_s17 = smov [#allocation8]   ;;  %s235_s15 = int_to_ptr.vmem [resolvable:$true] %s234_s15 }
  0x16   : > { %s2240_s13 = scalar_select %p1993_p8, 1, 0 }
  0x17   : > { %p1577_p9 = pneg %p1993_p8  ;;  %s250_s18 = sshll.u32 %s1881_s17, 4  ;;  %s251_s18 = int_to_ptr.vmem [resolvable:$true] %s250_s18 }
  0x18   : > { %s1882_s19 = smov [#allocation9]   ;;  %s1695_s21 = scalar_lea.vmem %s235_s15, 512 }
  0x19   : > { %p2002_p11 = pnand %p1577_p9, %p1973_p1  ;;  %s266_s20 = sshll.u32 %s1882_s19, 4  ;;  %s267_s20 = int_to_ptr.vmem [resolvable:$true] %s266_s20 }
  0x1a   : > { %p1696_p13 = scmp.ne.s32.totalorder %s235_s15, %s1695_s21  ;;  %p1703_p5 = scmp.lt.s32.totalorder %s235_s15, %s235_s15 }
  0x1b   : > { %p1686_p12 = pneg %p2002_p11  ;;  %p1704_p7 = scmp.lt.s32.totalorder %s1695_s21, %s1695_s21 }
  0x1d   : > { %p1698_p0 = pnand %p1696_p13, %p1686_p12  ;;  %p1705_p9 = por %p1704_p7, %p1703_p5 }
  0x1f   : > { %p1699_p3 = pneg %p1698_p0 }
  0x21   : > { %p1706_p10 = pnand %p1705_p9, %p1699_p3 }
  0x23   : > { %1709 = shalt.err (!%p1706_p10)
}
  0x24   : > { %s1883_s22 = smov 128   ;;  %s1884_s23 = smov 8  }
  0x25   : > { %s2242_s1 = sld [smem:[#allocation16_spill]]  ;;  %s1721_s14 = scalar_lea.vmem %s251_s18, 512 }
  0x26   : > { %p1722_p6 = scmp.ne.s32.totalorder %s251_s18, %s1721_s14  ;;  %p1729_p1 = scmp.lt.s32.totalorder %s251_s18, %s251_s18 }
  0x27   : > { %p1730_p4 = scmp.lt.s32.totalorder %s1721_s14, %s1721_s14 }
  0x28   : > { %p1724_p13 = pnand %p1722_p6, %p1686_p12 }
  0x29   : > { %p1731_p5 = por %p1730_p4, %p1729_p1 }
  0x2a   : > { %p1725_p0 = pneg %p1724_p13 }
  0x2b   : > { %1580 = dma.hbm_to_vmem [thread:$0]  (!%p2002_p11), %s2242_s1, 512, %s235_s15, [#allocation7], %s1883_s22, %s1883_s22, %s1884_s23  }
  0x2c   : > { %p1732_p3 = pnand %p1731_p5, %p1725_p0 }
  0x2e   : > { %1735 = shalt.err (!%p1732_p3)
}
  0x2f   : > { %s2243_s3 = sld [smem:[#allocation17_spill]]  ;;  %s1747_s15 = scalar_lea.vmem %s267_s20, 512 }
  0x30   : > { %p1748_p10 = scmp.ne.s32.totalorder %s267_s20, %s1747_s15  ;;  %p1755_p9 = scmp.lt.s32.totalorder %s267_s20, %s267_s20 }
  0x31   : > { %p1756_p13 = scmp.lt.s32.totalorder %s1747_s15, %s1747_s15 }
  0x32   : > { %p1750_p7 = pnand %p1748_p10, %p1686_p12 }
  0x33   : > { %p1757_p8 = por %p1756_p13, %p1755_p9 }
  0x34   : > { %p1751_p6 = pneg %p1750_p7 }
  0x35   : > { %1583 = dma.hbm_to_vmem [thread:$0]  (!%p2002_p11), %s2243_s3, 512, %s251_s18, [#allocation7], %s1883_s22, %s1883_s22, %s1884_s23  }
  0x36   : > { %p1758_p1 = pnand %p1757_p8, %p1751_p6 }
  0x38   : > { %1761 = shalt.err (!%p1758_p1)
}
  0x39   : > { %s2244_s5 = sld [smem:[#allocation18_spill]]  ;;  %s44_s18 = sadd.s32 1, %s1866_s26 }
  0x3a   : > { %s37_s8 = sadd.s32 1, %s1874_s28  ;;  %p51_p4 = scmp.ne.s32.totalorder %s1866_s26, %s1862_s25 }
  0x3b   : > { %p39_p8 = scmp.ge.s32.totalorder %s37_s8, 2  ;;  %p52_p12 = scmp.eq.s32.totalorder %s1878_s29, 0 }
  0x3c   : > { %p2039_p0 = por %p1977_p2, %p51_p4  ;;  %p1598_p5 = scmp.lt.s32.totalorder %s1878_s29, 2 }
  0x3d   : > { %s2258_s8 = smov (%p39_p8, %s37_s8), 0  ;;  %p53_p3 = por %p52_p12, %p51_p4 }
  0x3e   : > { %s283_s14 = sand.u32 1, %s1866_s26   ;;  %s41_s17 = ssub.s32 %s1874_s28, %s2258_s8 }
  0x3f   : > { %1586 = dma.hbm_to_vmem [thread:$0]  (!%p2002_p11), %s2244_s5, 512, %s267_s20, [#allocation10], %s1883_s22, %s1883_s22, %s1884_s23  }
  0x40   : > { %p42_p10 = scmp.eq.s32.totalorder %s41_s17, 0  ;;  %s1427_s20 = sshll.u32 %s283_s14, 3 }
  0x41   : > { %s1428_s22 = sshll.u32 %s1874_s28, 7  ;;  %s287_s21 = scalar_lea.vmem [#allocation3], %s1427_s20 }
  0x42   : > { %s2051_s23 = scalar_select %p42_p10, %s1866_s26, %s44_s18  }
  0x43   : > { %s292_s10 = scalar_lea.hbm %s2221_s0, %s1428_s22  ;;  %s294_s30 = sshll.u32 %s287_s21, 4  ;;  %s295_s30 = int_to_ptr.vmem [resolvable:$true] %s294_s30 }
  0x44   : > { %p2058_p2 = pnand %p1598_p5, %p53_p3  ;;  %s284_s3 = scalar_lea.sflag [#allocation4], %s283_s14 }
  0x45   : > { %s1775_s17 = scalar_lea.vmem %s295_s30, 128  ;;  %s1885_s18 = smov [#allocation3]  }
  0x46   : > { %p1764_p11 = pneg %p2058_p2  ;;  %p1776_p7 = scmp.ne.s32.totalorder %s295_s30, %s1775_s17 }
  0x47   : > { %s1780_s5 = sshll.u32 %s1885_s18, 4  ;;  %s1781_s5 = int_to_ptr.vmem [resolvable:$false] %s1780_s5 }
  0x48   : > { %p1778_p6 = pnand %p1776_p7, %p1764_p11  ;;  %s1782_s22 = scalar_lea.vmem %s1781_s5, 256 }
  0x49   : > { %p1783_p13 = scmp.lt.s32.totalorder %s295_s30, %s1781_s5  ;;  %p1784_p1 = scmp.lt.s32.totalorder %s1782_s22, %s1775_s17 }
  0x4a   : > { %p1779_p9 = pneg %p1778_p6 }
  0x4b   : > { %p1785_p4 = por %p1784_p1, %p1783_p13 }
  0x4d   : > { %p1786_p8 = pnand %p1785_p4, %p1779_p9 }
  0x4f   : > { %1789 = shalt.err (!%p1786_p8)
}
  0x50   : > { %1590 = dma.hbm_to_vmem [thread:$0]  (!%p2058_p2), %s292_s10, 128, %s295_s30, %s284_s3  }
  0x51   : > { %p2247_p12 = scmp.ne.s32.totalorder %s2240_s13, 0 }
  0x52   : > { %s2069_s14 = sand.u32 (!%p2247_p12), 1, %s1862_s25   ;;  %p2248_p5 = scmp.ne.s32.totalorder (!%p2247_p12), %s2238_s11, 0 }
  0x53   : > { %303 = sbr.rel (%p2247_p12) target bundleno = 1457 (0x5b1), region = 48  ;;  %s1430_s20 = sshll.u32 (!%p2247_p12), %s2069_s14, 3 }
  0x54   : > { %s306_s19 = scalar_lea.sflag (!%p2247_p12), [#allocation4], %s2069_s14  ;;  %s309_s5 = scalar_lea.vmem (!%p2247_p12), [#allocation3], %s1430_s20 }
  0x58   : > { %1841 = dma.done.wait (%p2248_p5), %s306_s19, 128  }
  0x59   : > { %1843 = vsyncadd (%p2248_p5), %s306_s19, 4294967168  ;;  %p2249_p3 = scmp.ne.s32.totalorder %s2236_s9, 0 }
  0x5b   : > { %1845 = dma.done.wait (%p2249_p3), [#allocation7], 1024  }
  0x5c   : > { %1847 = vsyncadd (%p2249_p3), [#allocation7], 4294966272 }
  0x5d   : > { %1849 = dma.done.wait (%p2249_p3), [#allocation10], 512  }
  0x5e   : > { %1851 = vsyncadd (%p2249_p3), [#allocation10], 4294966784  ;;  %v1886_v0 = vmov 0.0   ;;  %vm1887_vm0 = vmmov 0   ;;  %v360_v1 = vld [vmem:[#allocation8 + $0x18] sm:$0xff]  ;;  %v359_v2 = vld [vmem:[#allocation8 + $0x10] sm:$0xff] }
  0x5f   : > { %1488 = vmatprep.subr.mxu0 %v1886_v0  ;;  %1496 = vmatprep.mubr.msk.f32.mxu0 %vm1887_vm0, %v1886_v0  ;;  %v450_v3 = vld [vmem:[#allocation6 + $0x18] sm:$0xff]  ;;  %v358_v4 = vld [vmem:[#allocation8 + $0x8] sm:$0xff]  ;;  %v449_v5 = vld [vmem:[#allocation6 + $0x10] sm:$0xff]  ;;  %vm368_vm1 = vcmask 261120   ;;  %vm442_vm2 = vcmask 523264   ;;  %vm534_vm3 = vcmask 64512  }
  0x60   : > { %1499 = vmatprep.subr.mxu1 %v1886_v0  ;;  %1507 = vmatprep.mubr.msk.f32.mxu1 %vm1887_vm0, %v1886_v0  ;;  %v448_v6 = vld [vmem:[#allocation6 + $0x8] sm:$0xff]  ;;  %v357_v7 = vld [vmem:[#allocation8] sm:$0xff]  ;;  %v356_v8 = vld [vmem:[%s309_s5] sm:$0xff]  ;;  %s1888_s13 = smov 112   ;;  %s1889_s15 = smov 120   ;;  %vm1206_vm4 = vcmask 130048  }
  0x61   : > { %1489 = vmatpush3.msra.mxu0 %v360_v1  ;;  %1500 = vmatpush3.msra.mxu1 %v450_v3  ;;  %v447_v9 = vld [vmem:[#allocation6] sm:$0xff]  ;;  %v1435_v10 = vld [vmem:[%s2225_s4] ss:$0 sm:$0xff]  ;;  %s1890_s10 = smov 104   ;;  %s1891_s21 = smov 96   ;;  %vm1208_vm5 = vcmask 195584  }
  0x62   : > { %1490 = vmatprep.subr.mxu0 %v1886_v0  ;;  %1501 = vmatprep.subr.mxu1 %v1886_v0  ;;  %v1437_v16 = vld [vmem:[%s2223_s2] ss:$0 sm:$0xff]  ;;  %s1892_s30 = smov 80   ;;  %s1893_s17 = smov 72  }
  0x63   : > { %1491 = vmatpush3.msra.mxu0 %v359_v2  ;;  %1502 = vmatpush3.msra.mxu1 %v449_v5  ;;  %s1894_s18 = smov 88   ;;  %s1895_s22 = smov 8  }
  0x64   : > { %1492 = vmatprep.subr.mxu0 %v1886_v0  ;;  %1503 = vmatprep.subr.mxu1 %v1886_v0  ;;  %s1896_s19 = smov 16   ;;  %s1897_s5 = smov 24  }
  0x65   : > { %1493 = vmatpush3.msra.mxu0 %v358_v4  ;;  %1504 = vmatpush3.msra.mxu1 %v448_v6  ;;  %s1454_s9 = sshll.u32 %s1870_s27, 7  ;;  %s351_s11 = scalar_lea.vmem [#allocation11], %s1430_s20 }
  0x66   : > { %1494 = vmatprep.subr.mxu0 %v1886_v0  ;;  %1505 = vmatprep.subr.mxu1 %v1886_v0  ;;  %s1898_s27 = smov [#allocation11]  }
  0x67   : > { %1495 = vmatpush3.msra.mxu0 %v357_v7  ;;  %1506 = vmatpush3.msra.mxu1 %v447_v9  ;;  %s1794_s20 = sshll.u32 %s1898_s27, 4  ;;  %s1795_s20 = int_to_ptr.vmem [resolvable:$false] %s1794_s20 }
  0x68   : > { %1497 = vmatmul.mubr.msk.f32.vlgmr.msra.gmra.mxu0 %vm368_vm1, %v356_v8  ;;  %1508 = vmatmul.mubr.msk.f32.vlgmr.msra.gmra.mxu1 %vm368_vm1, %v356_v8 }
  0x69   : > { %1510 = vmatprep.subr.mxu1 %v1886_v0  ;;  %1512 = vmatprep.mubr.msk.f32.mxu1 %vm1887_vm0, %v1886_v0 }
  0x6a   : > { %1520 = vmatprep.subr.mxu0 %v1886_v0  ;;  %1522 = vmatprep.mubr.msk.f32.mxu0 %vm1887_vm0, %v1886_v0 }
 0x128   : > { %v438_v11 = vpop.f32.mrf.mxu0  ;;  %v528_v13 = vpop.f32.mrf.mxu1 }
 0x129   : > { %v439_v12 = vadd.f32 %v1435_v10, %v438_v11  ;;  %v529_v17 = vadd.f32 %v1437_v16, %v528_v13  ;;  %v1213_v13 = vld [vmem:[#allocation9 + $0x18] sm:$0xff]  ;;  %v1210_v16 = vld [vmem:[#allocation9] sm:$0xff] }
 0x12a   : > { %v1498_v14 = vpop.f32.mrf.mxu0  ;;  %v1509_v15 = vpop.f32.mrf.mxu1 }
 0x12b   : > { %443 = vst.msk [vmem:[#allocation2] sm:$0xff] %vm442_vm2, %v439_v12  ;;  %v532_v19 = vmul.f32 0.17677669, %v529_v17  ;;  %v1212_v14 = vld [vmem:[#allocation9 + $0x10] sm:$0xff]  ;;  %v1211_v15 = vld [vmem:[#allocation9 + $0x8] sm:$0xff] }
 0x132   : > { %v2113_v18 = vld [vmem:[#allocation2] sm:$0xff] }
 0x133   : > { %865 = vrot.lane.b32.xlu1 %v2113_v18, %s1888_s13  ;;  %700 = vrot.lane.b32.xlu0 %v2113_v18, %s1889_s15 }
 0x134   : > { %1511 = vmatpush3.xpose.msk.msra.mxu1 %vm534_vm3, %v2113_v18 }
 0x135   : > { %1515 = vmatprep.subr.mxu1 %v1886_v0 }
 0x137   : > { %1513 = vmatmul.mubr.msk.f32.vlgmr.msra.gmra.mxu1 %vm534_vm3, %v532_v19  ;;  %863 = vrot.lane.b32.xlu1 %v532_v19, %s1888_s13  ;;  %s1310_s13 = sshll.u32 %s351_s11, 4  ;;  %s1311_s13 = int_to_ptr.vmem [resolvable:$true] %s1310_s13 }
 0x138   : > { %698 = vrot.lane.b32.xlu0 %v532_v19, %s1889_s15  ;;  %1517 = vmatprep.mubr.msk.f32.mxu1 %vm1887_vm0, %v1886_v0  ;;  %p1797_p7 = scmp.lt.s32.totalorder %s1311_s13, %s1795_s20 }
 0x13b   : > { %1028 = vrot.lane.b32.xlu1 %v532_v19, %s1890_s10 }
 0x13c   : > { %1030 = vrot.lane.b32.xlu0 %v2113_v18, %s1890_s10 }
 0x1a5   : > { %v701_v20 = vpop.permute.xlu0 %700  ;;  %v866_v21 = vpop.permute.xlu1 %865 }
 0x1a6   : > { %1521 = vmatpush3.xpose.msk.msra.mxu0 %vm534_vm3, %v701_v20 }
 0x1a7   : > { %1530 = vmatprep.subr.mxu0 %v1886_v0 }
 0x1a9   : > { %v864_v23 = vpop.permute.xlu1 %863 }
 0x1aa   : > { %v699_v22 = vpop.permute.xlu0 %698 }
 0x1ab   : > { %1523 = vmatmul.mubr.msk.f32.vlgmr.msra.gmra.mxu0 %vm534_vm3, %v699_v22 }
 0x1ac   : > { %1531 = vmatpush3.xpose.msk.msra.mxu0 %vm534_vm3, %v866_v21  ;;  %1532 = vmatprep.mubr.msk.f32.mxu0 %vm1887_vm0, %v1886_v0 }
 0x1ad   : > { %1540 = vmatprep.subr.mxu0 %v1886_v0  ;;  %v1029_v25 = vpop.permute.xlu1 %1028 }
 0x1ae   : > { %v1031_v24 = vpop.permute.xlu0 %1030 }
 0x1af   : > { %1533 = vmatmul.mubr.msk.f32.vlgmr.msra.gmra.mxu0 %vm534_vm3, %v864_v23 }
 0x1b0   : > { %1541 = vmatpush3.xpose.msk.msra.mxu0 %vm534_vm3, %v1031_v24  ;;  %1542 = vmatprep.mubr.msk.f32.mxu0 %vm1887_vm0, %v1886_v0 }
 0x1b1   : > { %1550 = vmatprep.subr.mxu0 %v1886_v0 }
 0x1b3   : > { %1543 = vmatmul.mubr.msk.f32.vlgmr.msra.gmra.mxu0 %vm534_vm3, %v1029_v25 }
 0x1b4   : > { %1558 = vmatprep.mubr.msk.f32.mxu0 %vm1887_vm0, %v1886_v0  ;;  %1551 = vmatpush3.msra.mxu0 %v1213_v13 }
 0x1b5   : > { %1552 = vmatprep.subr.mxu0 %v1886_v0 }
 0x1b6   : > { %1553 = vmatpush3.msra.mxu0 %v1212_v14 }
 0x1b7   : > { %1554 = vmatprep.subr.mxu0 %v1886_v0 }
 0x1b8   : > { %1555 = vmatpush3.msra.mxu0 %v1211_v15 }
 0x1b9   : > { %1556 = vmatprep.subr.mxu0 %v1886_v0 }
 0x1ba   : > { %1557 = vmatpush3.msra.mxu0 %v1210_v16 }
 0x1f7   : > { %v607_v26 = vpop.f32.mrf.mxu1 }
 0x1f8   : > { %v611_v27 = vsel %vm534_vm3, %v607_v26, -inf }
 0x1f9   : > { %612 = vmax.xlane.f32.xlu0 %v611_v27  ;;  %v1514_v28 = vpop.f32.mrf.mxu1 }
 0x1fa   : > { %v1451_v28 = vld [vmem:[%s2227_s6] ss:$0 sm:$0xff] }
 0x26b   : > { %v772_v29 = vpop.f32.mrf.mxu0 }
 0x26c   : > { %v776_v30 = vsel %vm534_vm3, %v772_v29, -inf }
 0x26d   : > { %777 = vmax.xlane.f32.xlu1 %v776_v30  ;;  %v1524_v31 = vpop.f32.mrf.mxu0 }
 0x26f   : > { %v937_v32 = vpop.f32.mrf.mxu0 }
 0x270   : > { %v941_v33 = vsel %vm534_vm3, %v937_v32, -inf }
 0x271   : > { %942 = vmax.xlane.f32.xlu0 %v941_v33  ;;  %v1534_v34 = vpop.f32.mrf.mxu0 }
 0x273   : > { %v1102_v35 = vpop.f32.mrf.mxu0 }
 0x274   : > { %v1106_v36 = vsel %vm534_vm3, %v1102_v35, -inf }
 0x275   : > { %1107 = vmax.xlane.f32.xlu0 %v1106_v36  ;;  %v1544_v37 = vpop.f32.mrf.mxu0 }
 0x27e   : > { %622 = vrot.lane.b32.xlu1 %v2113_v18, %s1891_s21  ;;  %s2178_s21 = scalar_lea.hbm %s2228_s7, %s1454_s9 }
 0x282   : > { %v613_v38 = vpop.xlane.xlu0 %612 }
 0x283   : > { %v614_v39 = vsub.f32 %v607_v26, %v613_v38 }
 0x285   : > { %v615_v40 = vmul.f32 1.442695, %v614_v39 }
 0x287   : > { %1668 = vpow2.f32 %v615_v40 }
 0x294   : > { %v1669_v41 = vpop.eup %1668 }
 0x295   : > { %v617_v42 = vsel %vm534_vm3, %v1669_v41, 0.0 }
 0x2a2   : > { %618 = vadd.xlane.f32.xlu1 %v617_v42 }
 0x2f6   : > { %v778_v43 = vpop.xlane.xlu1 %777 }
 0x2f7   : > { %v779_v44 = vsub.f32 %v772_v29, %v778_v43 }
 0x2f9   : > { %v780_v45 = vmul.f32 1.442695, %v779_v44 }
 0x2fa   : > { %v623_v46 = vpop.permute.xlu1 %622  ;;  %v943_v47 = vpop.xlane.xlu0 %942 }
 0x2fb   : > { %1670 = vpow2.f32 %v780_v45  ;;  %v944_v48 = vsub.f32 %v937_v32, %v943_v47  ;;  %1516 = vmatpush3.msra.mxu1 %v623_v46 }
 0x2fc   : > { %1525 = vmatprep.subr.mxu1 %v1886_v0 }
 0x2fd   : > { %v945_v49 = vmul.f32 1.442695, %v944_v48 }
 0x2fe   : > { %v1108_v50 = vpop.xlane.xlu0 %1107 }
 0x2ff   : > { %1672 = vpow2.f32 %v945_v49  ;;  %v1109_v51 = vsub.f32 %v1102_v35, %v1108_v50 }
 0x301   : > { %v1110_v52 = vmul.f32 1.442695, %v1109_v51 }
 0x303   : > { %1674 = vpow2.f32 %v1110_v52 }
 0x308   : > { %v1671_v53 = vpop.eup %1670 }
 0x309   : > { %v782_v54 = vsel %vm534_vm3, %v1671_v53, 0.0 }
 0x30a   : > { %783 = vadd.xlane.f32.xlu0 %v782_v54 }
 0x30c   : > { %v1673_v55 = vpop.eup %1672 }
 0x30d   : > { %v947_v56 = vsel %vm534_vm3, %v1673_v55, 0.0 }
 0x30e   : > { %948 = vadd.xlane.f32.xlu1 %v947_v56 }
 0x310   : > { %v1675_v57 = vpop.eup %1674 }
 0x311   : > { %v1112_v58 = vsel %vm534_vm3, %v1675_v57, 0.0 }
 0x312   : > { %1113 = vadd.xlane.f32.xlu0 %v1112_v58 }
 0x31f   : > { %952 = vrot.lane.b32.xlu1 %v2113_v18, %s1892_s30  ;;  %s1296_s30 = scalar_lea.sflag [#allocation5], %s2069_s14 }
 0x323   : > { %1117 = vrot.lane.b32.xlu1 %v2113_v18, %s1893_s17  ;;  %s1790_s17 = scalar_lea.vmem %s1311_s13, 128 }
 0x324   : > { %p1791_p10 = scmp.ne.s32.totalorder %s1311_s13, %s1790_s17 }
 0x326   : > { %p1792_p2 = pnand %p1791_p10, %p2039_p0 }
 0x328   : > { %787 = vrot.lane.b32.xlu0 %v2113_v18, %s1894_s18  ;;  %p1793_p11 = pneg %p1792_p2  ;;  %s1796_s18 = scalar_lea.vmem %s1795_s20, 256 }
 0x329   : > { %p1798_p6 = scmp.lt.s32.totalorder %s1796_s18, %s1790_s17 }
 0x32b   : > { %v619_v59 = vpop.xlane.xlu1 %618  ;;  %p1799_p9 = por %p1798_p6, %p1797_p7 }
 0x32c   : > { %1676 = vrcp.f32 %v619_v59 }
 0x32d   : > { %p1800_p13 = pnand %p1799_p9, %p1793_p11 }
 0x339   : > { %v1677_v60 = vpop.eup %1676 }
 0x33a   : > { %v621_v61 = vmul.f32 %v1677_v60, %v1669_v41 }
 0x33c   : > { %1518 = vmatmul.mubr.msk.f32.vlgmr.msra.gmra.mxu1 %vm534_vm3, %v621_v61 }
 0x33d   : > { %1527 = vmatprep.mubr.msk.f32.mxu1 %vm1887_vm0, %v1886_v0 }
 0x393   : > { %v784_v62 = vpop.xlane.xlu0 %783 }
 0x394   : > { %1678 = vrcp.f32 %v784_v62 }
 0x397   : > { %v949_v63 = vpop.xlane.xlu1 %948 }
 0x398   : > { %1680 = vrcp.f32 %v949_v63 }
 0x39b   : > { %v1114_v1 = vpop.xlane.xlu0 %1113  ;;  %v953_v4 = vpop.permute.xlu1 %952 }
 0x39c   : > { %1682 = vrcp.f32 %v1114_v1 }
 0x39f   : > { %v788_v2 = vpop.permute.xlu0 %787  ;;  %v1118_v8 = vpop.permute.xlu1 %1117 }
 0x3a0   : > { %1526 = vmatpush3.msra.mxu1 %v788_v2 }
 0x3a1   : > { %v1679_v3 = vpop.eup %1678  ;;  %1535 = vmatprep.subr.mxu1 %v1886_v0 }
 0x3a2   : > { %v786_v5 = vmul.f32 %v1679_v3, %v1671_v53 }
 0x3a4   : > { %1528 = vmatmul.mubr.msk.f32.vlgmr.msra.gmra.mxu1 %vm534_vm3, %v786_v5 }
 0x3a5   : > { %v1681_v6 = vpop.eup %1680  ;;  %1536 = vmatpush3.msra.mxu1 %v953_v4  ;;  %1537 = vmatprep.mubr.msk.f32.mxu1 %vm1887_vm0, %v1886_v0 }
 0x3a6   : > { %1545 = vmatprep.subr.mxu1 %v1886_v0  ;;  %v951_v7 = vmul.f32 %v1681_v6, %v1673_v55 }
 0x3a8   : > { %1538 = vmatmul.mubr.msk.f32.vlgmr.msra.gmra.mxu1 %vm534_vm3, %v951_v7 }
 0x3a9   : > { %v1683_v9 = vpop.eup %1682  ;;  %1546 = vmatpush3.msra.mxu1 %v1118_v8  ;;  %1547 = vmatprep.mubr.msk.f32.mxu1 %vm1887_vm0, %v1886_v0 }
 0x3aa   : > { %v1116_v10 = vmul.f32 %v1683_v9, %v1675_v57 }
 0x3ac   : > { %1548 = vmatmul.mubr.msk.f32.vlgmr.msra.gmra.mxu1 %vm534_vm3, %v1116_v10 }
 0x3fc   : > { %v694_v11 = vpop.f32.mrf.mxu1 }
 0x3fe   : > { %v1519_v12 = vpop.f32.mrf.mxu1 }
 0x464   : > { %v859_v17 = vpop.f32.mrf.mxu1 }
 0x465   : > { %1194 = vrot.lane.b32.xlu0 %v859_v17, %s1895_s22 }
 0x466   : > { %v1529_v18 = vpop.f32.mrf.mxu1 }
 0x468   : > { %v1024_v19 = vpop.f32.mrf.mxu1 }
 0x469   : > { %1198 = vrot.lane.b32.xlu1 %v1024_v19, %s1896_s19 }
 0x46a   : > { %v1539_v20 = vpop.f32.mrf.mxu1 }
 0x46c   : > { %v1189_v21 = vpop.f32.mrf.mxu1 }
 0x46d   : > { %1202 = vrot.lane.b32.xlu0 %v1189_v21, %s1897_s5 }
 0x46e   : > { %v1549_v22 = vpop.f32.mrf.mxu1 }
 0x4d7   : > { %v1195_v23 = vpop.permute.xlu0 %1194 }
 0x4d8   : > { %v1205_v0 = vsel %vm534_vm3, %v694_v11, %v1195_v23 }
 0x4db   : > { %v1199_v24 = vpop.permute.xlu1 %1198 }
 0x4dc   : > { %v1207_v25 = vsel %vm1206_vm4, %v1205_v0, %v1199_v24 }
 0x4df   : > { %v1203_v26 = vpop.permute.xlu0 %1202 }
 0x4e0   : > { %v1209_v27 = vsel %vm1208_vm5, %v1207_v25, %v1203_v26 }
 0x4e1   : > { %1559 = vmatmul.mubr.msk.f32.vlgmr.msra.gmra.mxu0 %vm368_vm1, %v1209_v27 }
 0x5a1   : > { %v1290_v29 = vpop.f32.mrf.mxu0 }
 0x5a2   : > { %v1291_v30 = vadd.f32 %v1451_v28, %v1290_v29 }
 0x5a3   : > { %v1560_v31 = vpop.f32.mrf.mxu0 }
 0x5a4   : > { %1294 = vst.msk [vmem:[%s351_s11] sm:$0xff] %vm368_vm1, %v1291_v30 }
 0x5a5   : > { %1803 = shalt.err (!%p1800_p13)
}
 0x5a6   : > { %s1804_s22 = scalar_lea.hbm %s2178_s21, 128  ;;  %s1808_s5 = scalar_lea.hbm %s2228_s7, 256 }
 0x5a7   : > { %p1805_p1 = scmp.ne.s32.totalorder %s2178_s21, %s1804_s22  ;;  %p1809_p12 = scmp.lt.s32.totalorder %s2178_s21, %s2228_s7 }
 0x5a8   : > { %p1810_p5 = scmp.lt.s32.totalorder %s1808_s5, %s1804_s22 }
 0x5a9   : > { %p1806_p4 = pnand %p1805_p1, %p2039_p0 }
 0x5aa   : > { %p1811_p3 = por %p1810_p5, %p1809_p12 }
 0x5ab   : > { %p1807_p8 = pneg %p1806_p4 }
 0x5ad   : > { %p1812_p10 = pnand %p1811_p3, %p1807_p8 }
 0x5af   : > { %1815 = shalt.err (!%p1812_p10)
}
 0x5b0   : > { %1575 = dma.vmem_to_hbm [thread:$0]  (%p2039_p0), %s1311_s13, 128, %s2178_s21, %s1296_s30  }
 0x5b1 PF: > { %s1322_s9 = sand.u32 1, %s1858_s24   ;;  %p2250_p2 = scmp.ne.s32.totalorder %s2239_s12, 0 }
 0x5b2   : > { %p2251_p11 = scmp.ge.s32.totalorder %s1878_s29, 2  ;;  %s1323_s11 = scalar_lea.sflag [#allocation5], %s1322_s9 }
 0x5b4   : > { %p1592_p7 = pnand %p2251_p11, %p2250_p2 }
 0x5b6   : > { %p1593_p6 = pneg %p1592_p7 }
 0x5b8   : > { %1853 = dma.done.wait (%p1593_p6), %s1323_s11, 128  }
 0x5b9   : > { %1855 = vsyncadd (%p1593_p6), %s1323_s11, 4294967168  ;;  %s25_s29 = sadd.s32 1, %s1878_s29   ;;  %s2252_s24 = smov %s1862_s25 }
 0x5ba   : > { %p22_p9 = scmp.ge.s32.totalorder %s25_s29, 4   ;;  %s2253_s25 = smov %s1866_s26 }
 0x5bb   : > { %s2254_s26 = smov %s2051_s23  ;;  %s2255_s27 = smov %s1874_s28 }
 0x5bc   : > { %s2256_s28 = smov %s2258_s8  ;;  %24 = sbr.rel (!%p22_p9) target bundleno = 12 (0xc), region = 110 }
 0x5c1   :  { %1328 = vsyncpa [#allocation4], 1 }
 0x5c2   :  { %1330 = vsyncpa [#allocation4 + $0x1], 1 }
 0x5c3   :  { %1331 = vsyncpa [#allocation7], 1 }
 0x5c4   :  { %1332 = vsyncpa [#allocation10], 1 }
 0x5c5   :  { %1333 = vsyncpa [#allocation5], 1 }
 0x5c6   :  { %1335 = vsyncpa [#allocation5 + $0x1], 1 }

</bundles_post_ra>
